<compile_context>
chip_gen: v7x
topology: tpu7x:2x2x1
jax: 0.10.0
libtpu: 0.0.40
codegen_flags: <defaults>
</compile_context>

<pallas_src>
import jax
import jax.numpy as jnp
from jax.experimental import pallas as pl
from jax.experimental.pallas import tpu as pltpu


def _round_up(n, m):
    return ((n + m - 1) // m) * m


def _pick_batch_tile(B, max_tile=1024):
    """Largest batch tile (multiple of 8, <= max_tile) dividing B.

    Prefers a tile whose grid has an even number (>=2) of steps so the batch axis can
    be split evenly across v7x's two TensorCores; otherwise just takes the largest
    divisor (a 1-step grid is optimal on single-TC v5e/v6e).
    """
    if B % 8 != 0:
        return B  # full-extent block fallback (small / odd batches)
    candidates = [c for c in (2048, 1024, 512, 256, 128, 64, 32, 16, 8)
                  if c <= max_tile and B % c == 0]
    if not candidates:
        return B
    for c in candidates:  # largest first
        steps = B // c
        if steps >= 2 and steps % 2 == 0:
            return c
    return candidates[0]


def ffnn_multi_kernel(x_ref, w1_ref, b1_ref, w2_ref, b2_ref, w3_ref, b3_ref, o_ref):
    cd = w1_ref.dtype                       # MXU compute dtype (bf16 by default)
    x = x_ref[...].astype(cd)               # cast in-kernel: no extra wrapper pass over x
    # Layer 1: Linear + ReLU   (dropout_1 == identity at eval)
    h1 = jnp.dot(x, w1_ref[...], preferred_element_type=jnp.float32)
    h1 = jnp.maximum(h1 + b1_ref[...], 0.0).astype(cd)
    # Layer 2: Linear + ReLU   (dropout_2 == identity at eval)
    h2 = jnp.dot(h1, w2_ref[...], preferred_element_type=jnp.float32)
    h2 = jnp.maximum(h2 + b2_ref[...], 0.0).astype(cd)
    # Classifier: Linear -> unpadded (tb, 4) logits, stored in f32
    out = jnp.dot(h2, w3_ref[...], preferred_element_type=jnp.float32)
    o_ref[...] = (out + b3_ref[...]).astype(o_ref.dtype)


def ffnn_multi(x, w1, b1, w2, b2, w3, b3, *, batch_tile=None,
               compute_dtype=jnp.bfloat16, single_buffer_weights=True):
    B, D_in = x.shape
    H1 = w1.shape[1]
    H2 = w2.shape[1]
    C = w3.shape[1]

    tb = _pick_batch_tile(B) if batch_tile is None else batch_tile
    assert B % tb == 0, "batch_tile must divide the batch size"
    assert tb == B or tb % 8 == 0, "batch_tile must be a multiple of 8 (sublane rule)"

    # Hidden dims padded to 128 for lane-dense intermediates; x's D_in and the 4-wide
    # classifier output stay unpadded (exactness preserved: padded rows/cols/biases=0).
    H1p = _round_up(H1, 128)
    H2p = _round_up(H2, 128)

    def pad2(a, r, c):
        return jnp.pad(a, ((0, r - a.shape[0]), (0, c - a.shape[1])))

    cd = compute_dtype
    w1p = pad2(w1, D_in, H1p).astype(cd)      # contraction dim left unpadded
    w2p = pad2(w2, H1p, H2p).astype(cd)
    w3p = pad2(w3, H2p, C).astype(cd)         # output dim left unpadded (4 classes)
    b1p = pad2(b1, 1, H1p).astype(jnp.float32)
    b2p = pad2(b2, 1, H2p).astype(jnp.float32)
    b3p = b3.astype(jnp.float32)

    grid = (B // tb,)
    itemsize = jnp.dtype(cd).itemsize
    w_bytes = (D_in * H1p + H1p * H2p + H2p * C) * itemsize
    b_bytes = (H1p + H2p + C) * 4

    cost = pl.CostEstimate(
        flops=2 * B * (D_in * H1p + H1p * H2p + H2p * C),
        transcendentals=0,
        # x read (f32, unpadded) + weights/biases fetched once + unpadded f32 output.
        bytes_accessed=B * D_in * 4 + w_bytes + b_bytes + B * C * 4,
    )

    def const_spec(shape, buffered):
        idx = lambda i: (0,) * len(shape)
        if buffered and hasattr(pl, "Buffered"):
            try:
                # Constant-index blocks are fetched once -> single buffer is enough.
                return pl.BlockSpec(shape, idx, pipeline_mode=pl.Buffered(1))
            except TypeError:
                pass
        return pl.BlockSpec(shape, idx)

    def build(buffered):
        in_specs = [
            pl.BlockSpec((tb, D_in), lambda i: (i, 0)),   # x tile, unpadded f32
            const_spec((D_in, H1p), buffered),            # W1
            const_spec((1, H1p), buffered),               # b1
            const_spec((H1p, H2p), buffered),             # W2
            const_spec((1, H2p), buffered),               # b2
            const_spec((H2p, C), buffered),               # W3
            const_spec((1, C), buffered),                 # b3
        ]
        out_spec = pl.BlockSpec((tb, C), lambda i: (i, 0))  # unpadded (tb, 4) logits

        weight_bufs = 1 if buffered else 2
        vmem_need = (2 * tb * D_in * 4                      # x tile (double-buffered)
                     + weight_bufs * (w_bytes + b_bytes)    # resident weights/biases
                     + 2 * tb * C * 4                       # output tile
                     + tb * (H1p + H2p) * 4)                # live f32 intermediates
        vmem_limit = int(min(max(2 * vmem_need, 16 << 20), 64 << 20))

        return pl.pallas_call(
            ffnn_multi_kernel,
            out_shape=jax.ShapeDtypeStruct((B, C), jnp.float32),
            grid_spec=pltpu.PrefetchScalarGridSpec(
                num_scalar_prefetch=0,
                grid=grid,
                in_specs=in_specs,
                out_specs=out_spec,
            ),
            compiler_params=pltpu.CompilerParams(
                dimension_semantics=("parallel",),
                vmem_limit_bytes=vmem_limit,
            ),
            cost_estimate=cost,
        )

    args = (x, w1p, b1p, w2p, b2p, w3p, b3p)
    try:
        return build(single_buffer_weights)(*args)
    except Exception:
        if not single_buffer_weights:
            raise
        # Fallback: default double-buffered weight specs (older jax / rejected mode).
        return build(False)(*args)


def init_params(key, input_size, hidden_size_1, hidden_size_2, num_classes=4):
    """Deterministic PyTorch-Linear-style init; weights stored as [in, out]."""
    def linear(k, fan_in, fan_out):
        kw, kb = jax.random.split(k)
        bound = 1.0 / jnp.sqrt(fan_in)
        w = jax.random.uniform(kw, (fan_in, fan_out), jnp.float32, -bound, bound)
        b = jax.random.uniform(kb, (1, fan_out), jnp.float32, -bound, bound)
        return w, b

    k1, k2, k3 = jax.random.split(key, 3)
    w1, b1 = linear(k1, input_size, hidden_size_1)
    w2, b2 = linear(k2, hidden_size_1, hidden_size_2)
    w3, b3 = linear(k3, hidden_size_2, num_classes)
    return w1, b1, w2, b2, w3, b3


def reference_mixed(x, w1, b1, w2, b2, w3, b3, compute_dtype=jnp.bfloat16):
    """Reference using the same bf16-inputs / f32-accumulation recipe as the kernel."""
    cd = compute_dtype
    h1 = jnp.dot(x.astype(cd), w1.astype(cd), preferred_element_type=jnp.float32) + b1
    h1 = jnp.maximum(h1, 0.0)
    h2 = jnp.dot(h1.astype(cd), w2.astype(cd), preferred_element_type=jnp.float32) + b2
    h2 = jnp.maximum(h2, 0.0)
    return jnp.dot(h2.astype(cd), w3.astype(cd), preferred_element_type=jnp.float32) + b3


def reference_f32(x, w1, b1, w2, b2, w3, b3):
    h1 = jnp.maximum(x @ w1 + b1, 0.0)
    h2 = jnp.maximum(h1 @ w2 + b2, 0.0)
    return h2 @ w3 + b3


if __name__ == "__main__":
    key = jax.random.PRNGKey(0)
    kx, kp = jax.random.split(key)

    batch = 64             # -> tile 32, even 2-step grid (pipelined / dual-TC shardable)
    input_size = 32
    hidden_size_1 = 64
    hidden_size_2 = 32
    num_classes = 4

    x = jax.random.normal(kx, (batch, input_size), jnp.float32)
    params = init_params(kp, input_size, hidden_size_1, hidden_size_2, num_classes)

    out = ffnn_multi(x, *params)
    out = jax.block_until_ready(out)
    assert out.shape == (batch, num_classes)
    assert out.dtype == jnp.float32

    # Tight check vs. a reference using the same bf16/f32-accum compute recipe.
    ref_m = reference_mixed(x, *params)
    assert jnp.allclose(out, ref_m, atol=1e-3, rtol=1e-3), "mismatch vs mixed-precision reference"

    # Loose sanity check vs. the pure-f32 forward pass (bf16 rounding only).
    ref_f = reference_f32(x, *params)
    assert jnp.allclose(out, ref_f, atol=1e-1, rtol=1e-1), "mismatch vs f32 reference"

    print("KERNEL_OK")
</pallas_src>

<mosaic_0001>
module attributes {stable_mosaic.version = 11 : i64} {
  func.func @ffnn_multi_kernel(%arg0: i32, %arg1: memref<32x32xf32, #tpu.memory_space<vmem>>, %arg2: memref<32x128xbf16, #tpu.memory_space<vmem>>, %arg3: memref<1x128xf32, #tpu.memory_space<vmem>>, %arg4: memref<128x128xbf16, #tpu.memory_space<vmem>>, %arg5: memref<1x128xf32, #tpu.memory_space<vmem>>, %arg6: memref<128x4xbf16, #tpu.memory_space<vmem>>, %arg7: memref<1x4xf32, #tpu.memory_space<vmem>>, %arg8: memref<32x4xf32, #tpu.memory_space<vmem>>) attributes {dimension_semantics = [#tpu.dimension_semantics<parallel>], iteration_bounds = array<i64: 2>, scalar_prefetch = 0 : i64, scratch_operands = 0 : i64, tpu.core_type = #tpu.core_type<tc>, window_params = [{transform_indices = @transform_0, window_bounds = array<i64: 32, 32>}, {pipeline_mode = #tpu.pipeline_mode<synchronous>, transform_indices = @transform_1, window_bounds = array<i64: 32, 128>}, {pipeline_mode = #tpu.pipeline_mode<synchronous>, transform_indices = @transform_2, window_bounds = array<i64: 1, 128>}, {pipeline_mode = #tpu.pipeline_mode<synchronous>, transform_indices = @transform_3, window_bounds = array<i64: 128, 128>}, {pipeline_mode = #tpu.pipeline_mode<synchronous>, transform_indices = @transform_4, window_bounds = array<i64: 1, 128>}, {pipeline_mode = #tpu.pipeline_mode<synchronous>, transform_indices = @transform_5, window_bounds = array<i64: 128, 4>}, {pipeline_mode = #tpu.pipeline_mode<synchronous>, transform_indices = @transform_6, window_bounds = array<i64: 1, 4>}, {transform_indices = @transform_7, window_bounds = array<i64: 32, 4>}]} {
    %c0 = arith.constant 0 : index
    %c0_0 = arith.constant 0 : index
    %0 = vector.load %arg1[%c0, %c0_0] : memref<32x32xf32, #tpu.memory_space<vmem>>, vector<32x32xf32>
    %1 = arith.truncf %0 : vector<32x32xf32> to vector<32x32xbf16>
    %c0_1 = arith.constant 0 : index
    %c0_2 = arith.constant 0 : index
    %2 = vector.load %arg2[%c0_1, %c0_2] : memref<32x128xbf16, #tpu.memory_space<vmem>>, vector<32x128xbf16>
    %cst = arith.constant dense<0.000000e+00> : vector<32x128xf32>
    %3 = tpu.matmul %1, %2, %cst {dimension_numbers = #tpu.dot_dimension_numbers<[1], [0], [0], [1], [0, 0, 1, 1], [], []>} : vector<32x32xbf16>, vector<32x128xbf16>, vector<32x128xf32> -> vector<32x128xf32>
    %c0_3 = arith.constant 0 : index
    %c0_4 = arith.constant 0 : index
    %4 = vector.load %arg3[%c0_3, %c0_4] : memref<1x128xf32, #tpu.memory_space<vmem>>, vector<1x128xf32>
    %5 = vector.broadcast %4 : vector<1x128xf32> to vector<32x128xf32>
    %6 = arith.addf %3, %5 : vector<32x128xf32>
    %cst_5 = arith.constant 0.000000e+00 : f32
    %7 = vector.broadcast %cst_5 : f32 to vector<32x128xf32>
    %8 = arith.maximumf %6, %7 : vector<32x128xf32>
    %9 = arith.truncf %8 : vector<32x128xf32> to vector<32x128xbf16>
    %c0_6 = arith.constant 0 : index
    %c0_7 = arith.constant 0 : index
    %10 = vector.load %arg4[%c0_6, %c0_7] : memref<128x128xbf16, #tpu.memory_space<vmem>>, vector<128x128xbf16>
    %cst_8 = arith.constant dense<0.000000e+00> : vector<32x128xf32>
    %11 = tpu.matmul %9, %10, %cst_8 {dimension_numbers = #tpu.dot_dimension_numbers<[1], [0], [0], [1], [0, 0, 1, 1], [], []>} : vector<32x128xbf16>, vector<128x128xbf16>, vector<32x128xf32> -> vector<32x128xf32>
    %c0_9 = arith.constant 0 : index
    %c0_10 = arith.constant 0 : index
    %12 = vector.load %arg5[%c0_9, %c0_10] : memref<1x128xf32, #tpu.memory_space<vmem>>, vector<1x128xf32>
    %13 = vector.broadcast %12 : vector<1x128xf32> to vector<32x128xf32>
    %14 = arith.addf %11, %13 : vector<32x128xf32>
    %cst_11 = arith.constant 0.000000e+00 : f32
    %15 = vector.broadcast %cst_11 : f32 to vector<32x128xf32>
    %16 = arith.maximumf %14, %15 : vector<32x128xf32>
    %17 = arith.truncf %16 : vector<32x128xf32> to vector<32x128xbf16>
    %c0_12 = arith.constant 0 : index
    %c0_13 = arith.constant 0 : index
    %18 = vector.load %arg6[%c0_12, %c0_13] : memref<128x4xbf16, #tpu.memory_space<vmem>>, vector<128x4xbf16>
    %cst_14 = arith.constant dense<0.000000e+00> : vector<32x4xf32>
    %19 = tpu.matmul %17, %18, %cst_14 {dimension_numbers = #tpu.dot_dimension_numbers<[1], [0], [0], [1], [0, 0, 1, 1], [], []>} : vector<32x128xbf16>, vector<128x4xbf16>, vector<32x4xf32> -> vector<32x4xf32>
    %c0_15 = arith.constant 0 : index
    %c0_16 = arith.constant 0 : index
    %20 = vector.load %arg7[%c0_15, %c0_16] : memref<1x4xf32, #tpu.memory_space<vmem>>, vector<1x4xf32>
    %21 = vector.broadcast %20 : vector<1x4xf32> to vector<32x4xf32>
    %22 = arith.addf %19, %21 : vector<32x4xf32>
    %c0_17 = arith.constant 0 : index
    %c0_18 = arith.constant 0 : index
    %23 = vector.load %arg8[%c0_17, %c0_18] : memref<32x4xf32, #tpu.memory_space<vmem>>, vector<32x4xf32>
    tpu.vector_store %arg8[%c0_17, %c0_18], %22 {strides = array<i32>} : memref<32x4xf32, #tpu.memory_space<vmem>>, vector<32x4xf32>,
    return
  }
  func.func @transform_0(%arg0: i32) -> (i32, i32) {
    %c0_i32 = arith.constant 0 : i32
    %c0_i32_0 = arith.constant 0 : i32
    return %arg0, %c0_i32 : i32, i32
  }
  func.func @transform_1(%arg0: i32) -> (i32, i32) {
    %c0_i32 = arith.constant 0 : i32
    %c0_i32_0 = arith.constant 0 : i32
    %c0_i32_1 = arith.constant 0 : i32
    return %c0_i32, %c0_i32_0 : i32, i32
  }
  func.func @transform_2(%arg0: i32) -> (i32, i32) {
    %c0_i32 = arith.constant 0 : i32
    %c0_i32_0 = arith.constant 0 : i32
    %c0_i32_1 = arith.constant 0 : i32
    return %c0_i32, %c0_i32_0 : i32, i32
  }
  func.func @transform_3(%arg0: i32) -> (i32, i32) {
    %c0_i32 = arith.constant 0 : i32
    %c0_i32_0 = arith.constant 0 : i32
    %c0_i32_1 = arith.constant 0 : i32
    return %c0_i32, %c0_i32_0 : i32, i32
  }
  func.func @transform_4(%arg0: i32) -> (i32, i32) {
    %c0_i32 = arith.constant 0 : i32
    %c0_i32_0 = arith.constant 0 : i32
    %c0_i32_1 = arith.constant 0 : i32
    return %c0_i32, %c0_i32_0 : i32, i32
  }
  func.func @transform_5(%arg0: i32) -> (i32, i32) {
    %c0_i32 = arith.constant 0 : i32
    %c0_i32_0 = arith.constant 0 : i32
    %c0_i32_1 = arith.constant 0 : i32
    return %c0_i32, %c0_i32_0 : i32, i32
  }
  func.func @transform_6(%arg0: i32) -> (i32, i32) {
    %c0_i32 = arith.constant 0 : i32
    %c0_i32_0 = arith.constant 0 : i32
    %c0_i32_1 = arith.constant 0 : i32
    return %c0_i32, %c0_i32_0 : i32, i32
  }
  func.func @transform_7(%arg0: i32) -> (i32, i32) {
    %c0_i32 = arith.constant 0 : i32
    %c0_i32_0 = arith.constant 0 : i32
    return %arg0, %c0_i32 : i32, i32
  }
}

module attributes {stable_mosaic.version = 11 : i64} {
  func.func @ffnn_multi_kernel(%arg0: i32, %arg1: memref<32x32xf32, #tpu.memory_space<vmem>>, %arg2: memref<32x128xbf16, #tpu.memory_space<vmem>>, %arg3: memref<1x128xf32, #tpu.memory_space<vmem>>, %arg4: memref<128x128xbf16, #tpu.memory_space<vmem>>, %arg5: memref<1x128xf32, #tpu.memory_space<vmem>>, %arg6: memref<128x4xbf16, #tpu.memory_space<vmem>>, %arg7: memref<1x4xf32, #tpu.memory_space<vmem>>, %arg8: memref<32x4xf32, #tpu.memory_space<vmem>>) attributes {dimension_semantics = [#tpu.dimension_semantics<parallel>], iteration_bounds = array<i64: 2>, scalar_prefetch = 0 : i64, scratch_operands = 0 : i64, tpu.core_type = #tpu.core_type<tc>, window_params = [{transform_indices = @transform_0, window_bounds = array<i64: 32, 32>}, {pipeline_mode = #tpu.pipeline_mode<synchronous>, transform_indices = @transform_1, window_bounds = array<i64: 32, 128>}, {pipeline_mode = #tpu.pipeline_mode<synchronous>, transform_indices = @transform_2, window_bounds = array<i64: 1, 128>}, {pipeline_mode = #tpu.pipeline_mode<synchronous>, transform_indices = @transform_3, window_bounds = array<i64: 128, 128>}, {pipeline_mode = #tpu.pipeline_mode<synchronous>, transform_indices = @transform_4, window_bounds = array<i64: 1, 128>}, {pipeline_mode = #tpu.pipeline_mode<synchronous>, transform_indices = @transform_5, window_bounds = array<i64: 128, 4>}, {pipeline_mode = #tpu.pipeline_mode<synchronous>, transform_indices = @transform_6, window_bounds = array<i64: 1, 4>}, {transform_indices = @transform_7, window_bounds = array<i64: 32, 4>}]} {
    %c0 = arith.constant 0 : index
    %c0_0 = arith.constant 0 : index
    %0 = vector.load %arg1[%c0, %c0_0] : memref<32x32xf32, #tpu.memory_space<vmem>>, vector<32x32xf32>
    %1 = arith.truncf %0 : vector<32x32xf32> to vector<32x32xbf16>
    %c0_1 = arith.constant 0 : index
    %c0_2 = arith.constant 0 : index
    %2 = vector.load %arg2[%c0_1, %c0_2] : memref<32x128xbf16, #tpu.memory_space<vmem>>, vector<32x128xbf16>
    %cst = arith.constant dense<0.000000e+00> : vector<32x128xf32>
    %3 = tpu.matmul %1, %2, %cst {dimension_numbers = #tpu.dot_dimension_numbers<[1], [0], [0], [1], [0, 0, 1, 1], [], []>} : vector<32x32xbf16>, vector<32x128xbf16>, vector<32x128xf32> -> vector<32x128xf32>
    %c0_3 = arith.constant 0 : index
    %c0_4 = arith.constant 0 : index
    %4 = vector.load %arg3[%c0_3, %c0_4] : memref<1x128xf32, #tpu.memory_space<vmem>>, vector<1x128xf32>
    %5 = vector.broadcast %4 : vector<1x128xf32> to vector<32x128xf32>
    %6 = arith.addf %3, %5 : vector<32x128xf32>
    %cst_5 = arith.constant 0.000000e+00 : f32
    %7 = vector.broadcast %cst_5 : f32 to vector<32x128xf32>
    %8 = arith.maximumf %6, %7 : vector<32x128xf32>
    %9 = arith.truncf %8 : vector<32x128xf32> to vector<32x128xbf16>
    %c0_6 = arith.constant 0 : index
    %c0_7 = arith.constant 0 : index
    %10 = vector.load %arg4[%c0_6, %c0_7] : memref<128x128xbf16, #tpu.memory_space<vmem>>, vector<128x128xbf16>
    %cst_8 = arith.constant dense<0.000000e+00> : vector<32x128xf32>
    %11 = tpu.matmul %9, %10, %cst_8 {dimension_numbers = #tpu.dot_dimension_numbers<[1], [0], [0], [1], [0, 0, 1, 1], [], []>} : vector<32x128xbf16>, vector<128x128xbf16>, vector<32x128xf32> -> vector<32x128xf32>
    %c0_9 = arith.constant 0 : index
    %c0_10 = arith.constant 0 : index
    %12 = vector.load %arg5[%c0_9, %c0_10] : memref<1x128xf32, #tpu.memory_space<vmem>>, vector<1x128xf32>
    %13 = vector.broadcast %12 : vector<1x128xf32> to vector<32x128xf32>
    %14 = arith.addf %11, %13 : vector<32x128xf32>
    %cst_11 = arith.constant 0.000000e+00 : f32
    %15 = vector.broadcast %cst_11 : f32 to vector<32x128xf32>
    %16 = arith.maximumf %14, %15 : vector<32x128xf32>
    %17 = arith.truncf %16 : vector<32x128xf32> to vector<32x128xbf16>
    %c0_12 = arith.constant 0 : index
    %c0_13 = arith.constant 0 : index
    %18 = vector.load %arg6[%c0_12, %c0_13] : memref<128x4xbf16, #tpu.memory_space<vmem>>, vector<128x4xbf16>
    %cst_14 = arith.constant dense<0.000000e+00> : vector<32x4xf32>
    %19 = tpu.matmul %17, %18, %cst_14 {dimension_numbers = #tpu.dot_dimension_numbers<[1], [0], [0], [1], [0, 0, 1, 1], [], []>} : vector<32x128xbf16>, vector<128x4xbf16>, vector<32x4xf32> -> vector<32x4xf32>
    %c0_15 = arith.constant 0 : index
    %c0_16 = arith.constant 0 : index
    %20 = vector.load %arg7[%c0_15, %c0_16] : memref<1x4xf32, #tpu.memory_space<vmem>>, vector<1x4xf32>
    %21 = vector.broadcast %20 : vector<1x4xf32> to vector<32x4xf32>
    %22 = arith.addf %19, %21 : vector<32x4xf32>
    %c0_17 = arith.constant 0 : index
    %c0_18 = arith.constant 0 : index
    %23 = vector.load %arg8[%c0_17, %c0_18] : memref<32x4xf32, #tpu.memory_space<vmem>>, vector<32x4xf32>
    tpu.vector_store %arg8[%c0_17, %c0_18], %22 {strides = array<i32>} : memref<32x4xf32, #tpu.memory_space<vmem>>, vector<32x4xf32>,
    return
  }
  func.func @transform_0(%arg0: i32) -> (i32, i32) {
    %c0_i32 = arith.constant 0 : i32
    %c0_i32_0 = arith.constant 0 : i32
    return %arg0, %c0_i32 : i32, i32
  }
  func.func @transform_1(%arg0: i32) -> (i32, i32) {
    %c0_i32 = arith.constant 0 : i32
    %c0_i32_0 = arith.constant 0 : i32
    %c0_i32_1 = arith.constant 0 : i32
    return %c0_i32, %c0_i32_0 : i32, i32
  }
  func.func @transform_2(%arg0: i32) -> (i32, i32) {
    %c0_i32 = arith.constant 0 : i32
    %c0_i32_0 = arith.constant 0 : i32
    %c0_i32_1 = arith.constant 0 : i32
    return %c0_i32, %c0_i32_0 : i32, i32
  }
  func.func @transform_3(%arg0: i32) -> (i32, i32) {
    %c0_i32 = arith.constant 0 : i32
    %c0_i32_0 = arith.constant 0 : i32
    %c0_i32_1 = arith.constant 0 : i32
    return %c0_i32, %c0_i32_0 : i32, i32
  }
  func.func @transform_4(%arg0: i32) -> (i32, i32) {
    %c0_i32 = arith.constant 0 : i32
    %c0_i32_0 = arith.constant 0 : i32
    %c0_i32_1 = arith.constant 0 : i32
    return %c0_i32, %c0_i32_0 : i32, i32
  }
  func.func @transform_5(%arg0: i32) -> (i32, i32) {
    %c0_i32 = arith.constant 0 : i32
    %c0_i32_0 = arith.constant 0 : i32
    %c0_i32_1 = arith.constant 0 : i32
    return %c0_i32, %c0_i32_0 : i32, i32
  }
  func.func @transform_6(%arg0: i32) -> (i32, i32) {
    %c0_i32 = arith.constant 0 : i32
    %c0_i32_0 = arith.constant 0 : i32
    %c0_i32_1 = arith.constant 0 : i32
    return %c0_i32, %c0_i32_0 : i32, i32
  }
  func.func @transform_7(%arg0: i32) -> (i32, i32) {
    %c0_i32 = arith.constant 0 : i32
    %c0_i32_0 = arith.constant 0 : i32
    return %arg0, %c0_i32 : i32, i32
  }
}

</mosaic_0001>

<bundles_post_ra>
// kernel: tpu_custom_call.1
= control target key start
LH: loop header
LB: loop body
LE: loop exit
PB: predicated region body
PF: predicated region fallthrough
CT: control target
= control target key end

     0   :  { %s861_s24 = smov 0   ;;  %s948_s0 = inlined_call_operand.vmem [shape: f32[64,32], index: 0, kind: input, shape index: {}]   ;;  %s949_s1 = inlined_call_operand.vmem [shape: bf16[32,128], index: 1, kind: input, shape index: {}]   ;;  %s950_s2 = inlined_call_operand.vmem [shape: f32[1,128], index: 2, kind: input, shape index: {}]   ;;  %s951_s3 = inlined_call_operand.vmem [shape: bf16[128,128], index: 3, kind: input, shape index: {}]   ;;  %s952_s4 = inlined_call_operand.vmem [shape: f32[1,128], index: 4, kind: input, shape index: {}]   ;;  %s953_s5 = inlined_call_operand.vmem [shape: bf16[128,4], index: 5, kind: input, shape index: {}]   ;;  %s954_s6 = inlined_call_operand.vmem [shape: f32[1,4], index: 6, kind: input, shape index: {}]   ;;  %s955_s7 = inlined_call_operand.vmem [shape: f32[64,4], index: 7, kind: output, shape index: {}]  }
   0x1 LB: > { %s681_s25 = sadd.s32 4294967295, %s819_s24   ;;  %p685_p0 = scmp.ge.s32.totalorder %s819_s24, 1  ;;  %s819_s24 = sphi %s861_s24, %s17_s24  }
   0x2   : > { %p238_p1 = scmp.lt.s32.totalorder %s819_s24, 3 }
   0x4   : > { %p239_p2 = pnand %p685_p0, %p238_p1 }
   0x5   : > { %v795_v0 = vld [vmem:[%s949_s1] sm:$0xff] (!%p239_p2)   ;;  %s686_s28 = sshll.u32 (!%p239_p2), %s681_s25, 2  ;;  %v796_v1 = vld [vmem:[%s949_s1 + $0x8] sm:$0xff] (!%p239_p2)   ;;  %v799_v4 = vld [vmem:[%s951_s3 + $0x10] sm:$0xff] (!%p239_p2)   ;;  %vm312_vm0 = vcmask (!%p239_p2), 261120   ;;  %vm620_vm1 = vcmask (!%p239_p2), 31744  }
   0x6   : > { %242 = sbr.rel (%p239_p2) target bundleno = 682 (0x2aa), region = 48  ;;  %p271_p3 = scmp.lt.s32.totalorder (!%p239_p2), %s686_s28, 7  ;;  %739 = vmatprep.subr.bf16.mxu0 (!%p239_p2), %v795_v0  ;;  %v797_v2 = vld [vmem:[%s951_s3] sm:$0xff] (!%p239_p2)   ;;  %v798_v3 = vld [vmem:[%s951_s3 + $0x8] sm:$0xff] (!%p239_p2)   ;;  %v800_v11 = vld [vmem:[%s951_s3 + $0x18] sm:$0xff] (!%p239_p2)  }
   0x7   : > { %740 = vmatpush3.bf16.msra.mxu0 (!%p239_p2), %v795_v0  ;;  %747 = vmatprep.subr.bf16.mxu1 (!%p239_p2), %v797_v2  ;;  %v801_v12 = vld [vmem:[%s951_s3 + $0x20] sm:$0xff] (!%p239_p2)   ;;  %v802_v13 = vld [vmem:[%s951_s3 + $0x28] sm:$0xff] (!%p239_p2)   ;;  %v803_v14 = vld [vmem:[%s951_s3 + $0x30] sm:$0xff] (!%p239_p2)  }
   0x8   : > { %741 = vmatprep.subr.bf16.mxu0 (!%p239_p2), %v796_v1  ;;  %748 = vmatpush3.bf16.msra.mxu1 (!%p239_p2), %v797_v2  ;;  %v804_v15 = vld [vmem:[%s951_s3 + $0x38] sm:$0xff] (!%p239_p2)   ;;  %v805_v16 = vld [vmem:[%s953_s5] sm:$0xff] (!%p239_p2)   ;;  %v806_v17 = vld [vmem:[%s953_s5 + $0x8] sm:$0xff] (!%p239_p2)  }
   0x9   : > { %749 = vmatprep.subr.bf16.mxu1 (!%p239_p2), %v798_v3  ;;  %v807_v18 = vld [vmem:[%s953_s5 + $0x10] sm:$0xff] (!%p239_p2)   ;;  %v808_v19 = vld [vmem:[%s953_s5 + $0x18] sm:$0xff] (!%p239_p2)   ;;  %v809_v20 = vld [vmem:[%s953_s5 + $0x20] sm:$0xff] (!%p239_p2)  }
   0xa   : > { %v810_v21 = vld [vmem:[%s953_s5 + $0x28] sm:$0xff] (!%p239_p2)   ;;  %v690_v22 = vld [vmem:[%s950_s2] ss:$0 sm:$0xff] (!%p239_p2)  ;;  %v811_v37 = vld [vmem:[%s953_s5 + $0x30] sm:$0xff] (!%p239_p2)  }
   0xb   : > { %742 = vmatpush3.bf16.msra.mxu0 (!%p239_p2), %v796_v1  ;;  %v812_v38 = vld [vmem:[%s953_s5 + $0x38] sm:$0xff] (!%p239_p2)   ;;  %v695_v39 = vld [vmem:[%s952_s4] ss:$0 sm:$0xff] (!%p239_p2) }
   0xc   : > { %750 = vmatpush3.bf16.msra.mxu1 (!%p239_p2), %v798_v3  ;;  %767 = vmatprep.subr.bf16.mxu0 (!%p239_p2), %v805_v16  ;;  %v704_v54 = vld [vmem:[%s954_s6] ss:$0 sm:$0xff] (!%p239_p2) }
   0xd   : > { %s957_s28 = smov (!%p271_p3, %s686_s28), 7  ;;  %751 = vmatprep.subr.bf16.mxu1 %v799_v4 }
   0xe   : > { %s687_s12 = sshll.u32 %s957_s28, 3 }
   0xf   : > { %s274_s15 = scalar_lea.vmem %s948_s0, %s687_s12  ;;  %s280_s11 = scalar_lea.vmem %s955_s7, %s687_s12 }
  0x10   : > { %v283_v5 = vld [vmem:[%s274_s15] sm:$0xff]  ;;  %v284_v6 = vld [vmem:[%s274_s15 + $0x8] sm:$0xff]  ;;  %v285_v7 = vld [vmem:[%s274_s15 + $0x10] sm:$0xff]  ;;  %752 = vmatpush3.bf16.msra.mxu1 %v799_v4 }
  0x11   : > { %v287_v8 = vpack.c.bf16 %v284_v6, %v283_v5  ;;  %v286_v9 = vld [vmem:[%s274_s15 + $0x18] sm:$0xff]  ;;  %753 = vmatprep.subr.bf16.mxu1 %v800_v11 }
  0x12   : > { %v288_v10 = vpack.c.bf16 %v286_v9, %v285_v7 }
  0x13   : > { %743 = vmatprep.mubr.msk.bf16.mxu0 %vm312_vm0, %v287_v8 }
  0x14   : > { %744 = vmatmul.mubr.msk.bf16.vlgmr.msra.gmra.mrb[0].mxu0 %vm312_vm0, %v288_v10  ;;  %754 = vmatpush3.bf16.msra.mxu1 %v800_v11 }
  0x15   : > { %755 = vmatprep.subr.bf16.mxu1 %v801_v12  ;;  %768 = vmatpush3.bf16.msra.mxu0 %v805_v16 }
  0x16   : > { %769 = vmatprep.subr.bf16.mxu0 %v806_v17 }
  0x18   : > { %756 = vmatpush3.bf16.msra.mxu1 %v801_v12 }
  0x19   : > { %757 = vmatprep.subr.bf16.mxu1 %v802_v13  ;;  %770 = vmatpush3.bf16.msra.mxu0 %v806_v17 }
  0x1a   : > { %771 = vmatprep.subr.bf16.mxu0 %v807_v18 }
  0x1c   : > { %758 = vmatpush3.bf16.msra.mxu1 %v802_v13 }
  0x1d   : > { %759 = vmatprep.subr.bf16.mxu1 %v803_v14  ;;  %772 = vmatpush3.bf16.msra.mxu0 %v807_v18 }
  0x1e   : > { %773 = vmatprep.subr.bf16.mxu0 %v808_v19 }
  0x20   : > { %760 = vmatpush3.bf16.msra.mxu1 %v803_v14 }
  0x21   : > { %761 = vmatprep.subr.bf16.mxu1 %v804_v15  ;;  %774 = vmatpush3.bf16.msra.mxu0 %v808_v19 }
  0x22   : > { %775 = vmatprep.subr.bf16.mxu0 %v809_v20 }
  0x24   : > { %762 = vmatpush3.bf16.msra.mxu1 %v804_v15 }
  0x25   : > { %776 = vmatpush3.bf16.msra.mxu0 %v809_v20 }
  0x26   : > { %777 = vmatprep.subr.bf16.mxu0 %v810_v21 }
  0x29   : > { %778 = vmatpush3.bf16.msra.mxu0 %v810_v21 }
  0x2a   : > { %779 = vmatprep.subr.bf16.mxu0 %v811_v37 }
  0x2d   : > { %780 = vmatpush3.bf16.msra.mxu0 %v811_v37 }
  0x2e   : > { %781 = vmatprep.subr.bf16.mxu0 %v812_v38 }
  0x31   : > { %782 = vmatpush3.bf16.msra.mxu0 %v812_v38 }
  0xe7   : > { %v745_v23 = vpop.f32.mrb[0].mxu0 }
  0xe8   : > { %v362_v24 = vadd.f32 %v745_v23, %v690_v22  ;;  %v353_v25 = vpop.f32.mrb[1].mxu0 }
  0xe9   : > { %v354_v26 = vadd.f32 %v690_v22, %v353_v25  ;;  %v746_v27 = vpop.f32.mrb[2].mxu0 }
  0xea   : > { %v365_v28 = vadd.f32 %v746_v27, %v690_v22  ;;  %v356_v29 = vpop.f32.mrb[3].mxu0  ;;  %v370_v31 = vmax.f32 %v362_v24, 0.0 }
  0xeb   : > { %v357_v30 = vadd.f32 %v690_v22, %v356_v29  ;;  %v368_v33 = vmax.f32 %v354_v26, 0.0 }
  0xec   : > { %v371_v32 = vmax.f32 %v365_v28, 0.0 }
  0xed   : > { %v369_v34 = vmax.f32 %v357_v30, 0.0 }
  0xee   : > { %v373_v35 = vpack.c.bf16 %v371_v32, %v370_v31 }
  0xef   : > { %v372_v36 = vpack.c.bf16 %v369_v34, %v368_v33 }
  0xf1   : > { %763 = vmatprep.mubr.bf16.mxu1 %v372_v36 }
  0xf2   : > { %764 = vmatmul.mubr.bf16.vlgmr.msra.gmra.mrb[0].mxu1 %v373_v35 }
 0x1c5   : > { %v765_v40 = vpop.f32.mrb[0].mxu1 }
 0x1c6   : > { %v488_v41 = vadd.f32 %v765_v40, %v695_v39  ;;  %v479_v42 = vpop.f32.mrb[1].mxu1 }
 0x1c7   : > { %v480_v43 = vadd.f32 %v695_v39, %v479_v42  ;;  %v766_v44 = vpop.f32.mrb[2].mxu1 }
 0x1c8   : > { %v491_v45 = vadd.f32 %v766_v44, %v695_v39  ;;  %v482_v46 = vpop.f32.mrb[3].mxu1  ;;  %v496_v48 = vmax.f32 %v488_v41, 0.0 }
 0x1c9   : > { %v483_v47 = vadd.f32 %v695_v39, %v482_v46  ;;  %v494_v50 = vmax.f32 %v480_v43, 0.0 }
 0x1ca   : > { %v497_v49 = vmax.f32 %v491_v45, 0.0 }
 0x1cb   : > { %v495_v51 = vmax.f32 %v483_v47, 0.0 }
 0x1cc   : > { %v499_v52 = vpack.c.bf16 %v497_v49, %v496_v48 }
 0x1cd   : > { %v498_v53 = vpack.c.bf16 %v495_v51, %v494_v50 }
 0x1cf   : > { %783 = vmatprep.mubr.bf16.mxu0 %v498_v53 }
 0x1d0   : > { %784 = vmatmul.mubr.bf16.vlgmr.msra.gmra.mrb[4].mxu0 %v499_v52 }
 0x2a3   : > { %v785_v55 = vpop.f32.mrb[4].mxu0 }
 0x2a4   : > { %v605_v56 = vpop.f32.mrb[5].mxu0  ;;  %v614_v61 = vadd.f32 %v785_v55, %v704_v54 }
 0x2a5   : > { %v606_v57 = vadd.f32 %v704_v54, %v605_v56  ;;  %v786_v58 = vpop.f32.mrb[6].mxu0 }
 0x2a6   : > { %v608_v59 = vpop.f32.mrb[7].mxu0  ;;  %v617_v62 = vadd.f32 %v786_v58, %v704_v54  ;;  %623 = vst.msk [vmem:[%s280_s11 + $0x10] sm:$0xff] %vm620_vm1, %v614_v61 }
 0x2a7   : > { %621 = vst.msk [vmem:[%s280_s11] sm:$0xff] %vm620_vm1, %v606_v57  ;;  %v609_v60 = vadd.f32 %v704_v54, %v608_v59 }
 0x2a8   : > { %624 = vst.msk [vmem:[%s280_s11 + $0x18] sm:$0xff] %vm620_vm1, %v617_v62 }
 0x2a9   : > { %622 = vst.msk [vmem:[%s280_s11 + $0x8] sm:$0xff] %vm620_vm1, %v609_v60 }
 0x2aa PF: > { %s17_s24 = sadd.s32 1, %s819_s24  }
 0x2ab   : > { %p14_p4 = scmp.ge.s32.totalorder %s17_s24, 4  }
 0x2ad   :  { %16 = sbr.rel (!%p14_p4) target bundleno = 1 (0x1), region = 78 }

// kernel: tpu_custom_call.1
= control target key start
LH: loop header
LB: loop body
LE: loop exit
PB: predicated region body
PF: predicated region fallthrough
CT: control target
= control target key end

     0   :  { %s861_s24 = smov 0   ;;  %s948_s0 = inlined_call_operand.vmem [shape: f32[64,32], index: 0, kind: input, shape index: {}]   ;;  %s949_s1 = inlined_call_operand.vmem [shape: bf16[32,128], index: 1, kind: input, shape index: {}]   ;;  %s950_s2 = inlined_call_operand.vmem [shape: f32[1,128], index: 2, kind: input, shape index: {}]   ;;  %s951_s3 = inlined_call_operand.vmem [shape: bf16[128,128], index: 3, kind: input, shape index: {}]   ;;  %s952_s4 = inlined_call_operand.vmem [shape: f32[1,128], index: 4, kind: input, shape index: {}]   ;;  %s953_s5 = inlined_call_operand.vmem [shape: bf16[128,4], index: 5, kind: input, shape index: {}]   ;;  %s954_s6 = inlined_call_operand.vmem [shape: f32[1,4], index: 6, kind: input, shape index: {}]   ;;  %s955_s7 = inlined_call_operand.vmem [shape: f32[64,4], index: 7, kind: output, shape index: {}]  }
   0x1 LB: > { %s681_s25 = sadd.s32 4294967295, %s819_s24   ;;  %p685_p0 = scmp.ge.s32.totalorder %s819_s24, 1  ;;  %s819_s24 = sphi %s861_s24, %s17_s24  }
   0x2   : > { %p238_p1 = scmp.lt.s32.totalorder %s819_s24, 3 }
   0x4   : > { %p239_p2 = pnand %p685_p0, %p238_p1 }
   0x5   : > { %v795_v0 = vld [vmem:[%s949_s1] sm:$0xff] (!%p239_p2)   ;;  %s686_s28 = sshll.u32 (!%p239_p2), %s681_s25, 2  ;;  %v796_v1 = vld [vmem:[%s949_s1 + $0x8] sm:$0xff] (!%p239_p2)   ;;  %v799_v4 = vld [vmem:[%s951_s3 + $0x10] sm:$0xff] (!%p239_p2)   ;;  %vm312_vm0 = vcmask (!%p239_p2), 261120   ;;  %vm620_vm1 = vcmask (!%p239_p2), 31744  }
   0x6   : > { %242 = sbr.rel (%p239_p2) target bundleno = 682 (0x2aa), region = 48  ;;  %p271_p3 = scmp.lt.s32.totalorder (!%p239_p2), %s686_s28, 7  ;;  %739 = vmatprep.subr.bf16.mxu0 (!%p239_p2), %v795_v0  ;;  %v797_v2 = vld [vmem:[%s951_s3] sm:$0xff] (!%p239_p2)   ;;  %v798_v3 = vld [vmem:[%s951_s3 + $0x8] sm:$0xff] (!%p239_p2)   ;;  %v800_v11 = vld [vmem:[%s951_s3 + $0x18] sm:$0xff] (!%p239_p2)  }
   0x7   : > { %740 = vmatpush3.bf16.msra.mxu0 (!%p239_p2), %v795_v0  ;;  %747 = vmatprep.subr.bf16.mxu1 (!%p239_p2), %v797_v2  ;;  %v801_v12 = vld [vmem:[%s951_s3 + $0x20] sm:$0xff] (!%p239_p2)   ;;  %v802_v13 = vld [vmem:[%s951_s3 + $0x28] sm:$0xff] (!%p239_p2)   ;;  %v803_v14 = vld [vmem:[%s951_s3 + $0x30] sm:$0xff] (!%p239_p2)  }
   0x8   : > { %741 = vmatprep.subr.bf16.mxu0 (!%p239_p2), %v796_v1  ;;  %748 = vmatpush3.bf16.msra.mxu1 (!%p239_p2), %v797_v2  ;;  %v804_v15 = vld [vmem:[%s951_s3 + $0x38] sm:$0xff] (!%p239_p2)   ;;  %v805_v16 = vld [vmem:[%s953_s5] sm:$0xff] (!%p239_p2)   ;;  %v806_v17 = vld [vmem:[%s953_s5 + $0x8] sm:$0xff] (!%p239_p2)  }
   0x9   : > { %749 = vmatprep.subr.bf16.mxu1 (!%p239_p2), %v798_v3  ;;  %v807_v18 = vld [vmem:[%s953_s5 + $0x10] sm:$0xff] (!%p239_p2)   ;;  %v808_v19 = vld [vmem:[%s953_s5 + $0x18] sm:$0xff] (!%p239_p2)   ;;  %v809_v20 = vld [vmem:[%s953_s5 + $0x20] sm:$0xff] (!%p239_p2)  }
   0xa   : > { %v810_v21 = vld [vmem:[%s953_s5 + $0x28] sm:$0xff] (!%p239_p2)   ;;  %v690_v22 = vld [vmem:[%s950_s2] ss:$0 sm:$0xff] (!%p239_p2)  ;;  %v811_v37 = vld [vmem:[%s953_s5 + $0x30] sm:$0xff] (!%p239_p2)  }
   0xb   : > { %742 = vmatpush3.bf16.msra.mxu0 (!%p239_p2), %v796_v1  ;;  %v812_v38 = vld [vmem:[%s953_s5 + $0x38] sm:$0xff] (!%p239_p2)   ;;  %v695_v39 = vld [vmem:[%s952_s4] ss:$0 sm:$0xff] (!%p239_p2) }
   0xc   : > { %750 = vmatpush3.bf16.msra.mxu1 (!%p239_p2), %v798_v3  ;;  %767 = vmatprep.subr.bf16.mxu0 (!%p239_p2), %v805_v16  ;;  %v704_v54 = vld [vmem:[%s954_s6] ss:$0 sm:$0xff] (!%p239_p2) }
   0xd   : > { %s957_s28 = smov (!%p271_p3, %s686_s28), 7  ;;  %751 = vmatprep.subr.bf16.mxu1 %v799_v4 }
   0xe   : > { %s687_s12 = sshll.u32 %s957_s28, 3 }
   0xf   : > { %s274_s15 = scalar_lea.vmem %s948_s0, %s687_s12  ;;  %s280_s11 = scalar_lea.vmem %s955_s7, %s687_s12 }
  0x10   : > { %v283_v5 = vld [vmem:[%s274_s15] sm:$0xff]  ;;  %v284_v6 = vld [vmem:[%s274_s15 + $0x8] sm:$0xff]  ;;  %v285_v7 = vld [vmem:[%s274_s15 + $0x10] sm:$0xff]  ;;  %752 = vmatpush3.bf16.msra.mxu1 %v799_v4 }
  0x11   : > { %v287_v8 = vpack.c.bf16 %v284_v6, %v283_v5  ;;  %v286_v9 = vld [vmem:[%s274_s15 + $0x18] sm:$0xff]  ;;  %753 = vmatprep.subr.bf16.mxu1 %v800_v11 }
  0x12   : > { %v288_v10 = vpack.c.bf16 %v286_v9, %v285_v7 }
  0x13   : > { %743 = vmatprep.mubr.msk.bf16.mxu0 %vm312_vm0, %v287_v8 }
  0x14   : > { %744 = vmatmul.mubr.msk.bf16.vlgmr.msra.gmra.mrb[0].mxu0 %vm312_vm0, %v288_v10  ;;  %754 = vmatpush3.bf16.msra.mxu1 %v800_v11 }
  0x15   : > { %755 = vmatprep.subr.bf16.mxu1 %v801_v12  ;;  %768 = vmatpush3.bf16.msra.mxu0 %v805_v16 }
  0x16   : > { %769 = vmatprep.subr.bf16.mxu0 %v806_v17 }
  0x18   : > { %756 = vmatpush3.bf16.msra.mxu1 %v801_v12 }
  0x19   : > { %757 = vmatprep.subr.bf16.mxu1 %v802_v13  ;;  %770 = vmatpush3.bf16.msra.mxu0 %v806_v17 }
  0x1a   : > { %771 = vmatprep.subr.bf16.mxu0 %v807_v18 }
  0x1c   : > { %758 = vmatpush3.bf16.msra.mxu1 %v802_v13 }
  0x1d   : > { %759 = vmatprep.subr.bf16.mxu1 %v803_v14  ;;  %772 = vmatpush3.bf16.msra.mxu0 %v807_v18 }
  0x1e   : > { %773 = vmatprep.subr.bf16.mxu0 %v808_v19 }
  0x20   : > { %760 = vmatpush3.bf16.msra.mxu1 %v803_v14 }
  0x21   : > { %761 = vmatprep.subr.bf16.mxu1 %v804_v15  ;;  %774 = vmatpush3.bf16.msra.mxu0 %v808_v19 }
  0x22   : > { %775 = vmatprep.subr.bf16.mxu0 %v809_v20 }
  0x24   : > { %762 = vmatpush3.bf16.msra.mxu1 %v804_v15 }
  0x25   : > { %776 = vmatpush3.bf16.msra.mxu0 %v809_v20 }
  0x26   : > { %777 = vmatprep.subr.bf16.mxu0 %v810_v21 }
  0x29   : > { %778 = vmatpush3.bf16.msra.mxu0 %v810_v21 }
  0x2a   : > { %779 = vmatprep.subr.bf16.mxu0 %v811_v37 }
  0x2d   : > { %780 = vmatpush3.bf16.msra.mxu0 %v811_v37 }
  0x2e   : > { %781 = vmatprep.subr.bf16.mxu0 %v812_v38 }
  0x31   : > { %782 = vmatpush3.bf16.msra.mxu0 %v812_v38 }
  0xe7   : > { %v745_v23 = vpop.f32.mrb[0].mxu0 }
  0xe8   : > { %v362_v24 = vadd.f32 %v745_v23, %v690_v22  ;;  %v353_v25 = vpop.f32.mrb[1].mxu0 }
  0xe9   : > { %v354_v26 = vadd.f32 %v690_v22, %v353_v25  ;;  %v746_v27 = vpop.f32.mrb[2].mxu0 }
  0xea   : > { %v365_v28 = vadd.f32 %v746_v27, %v690_v22  ;;  %v356_v29 = vpop.f32.mrb[3].mxu0  ;;  %v370_v31 = vmax.f32 %v362_v24, 0.0 }
  0xeb   : > { %v357_v30 = vadd.f32 %v690_v22, %v356_v29  ;;  %v368_v33 = vmax.f32 %v354_v26, 0.0 }
  0xec   : > { %v371_v32 = vmax.f32 %v365_v28, 0.0 }
  0xed   : > { %v369_v34 = vmax.f32 %v357_v30, 0.0 }
  0xee   : > { %v373_v35 = vpack.c.bf16 %v371_v32, %v370_v31 }
  0xef   : > { %v372_v36 = vpack.c.bf16 %v369_v34, %v368_v33 }
  0xf1   : > { %763 = vmatprep.mubr.bf16.mxu1 %v372_v36 }
  0xf2   : > { %764 = vmatmul.mubr.bf16.vlgmr.msra.gmra.mrb[0].mxu1 %v373_v35 }
 0x1c5   : > { %v765_v40 = vpop.f32.mrb[0].mxu1 }
 0x1c6   : > { %v488_v41 = vadd.f32 %v765_v40, %v695_v39  ;;  %v479_v42 = vpop.f32.mrb[1].mxu1 }
 0x1c7   : > { %v480_v43 = vadd.f32 %v695_v39, %v479_v42  ;;  %v766_v44 = vpop.f32.mrb[2].mxu1 }
 0x1c8   : > { %v491_v45 = vadd.f32 %v766_v44, %v695_v39  ;;  %v482_v46 = vpop.f32.mrb[3].mxu1  ;;  %v496_v48 = vmax.f32 %v488_v41, 0.0 }
 0x1c9   : > { %v483_v47 = vadd.f32 %v695_v39, %v482_v46  ;;  %v494_v50 = vmax.f32 %v480_v43, 0.0 }
 0x1ca   : > { %v497_v49 = vmax.f32 %v491_v45, 0.0 }
 0x1cb   : > { %v495_v51 = vmax.f32 %v483_v47, 0.0 }
 0x1cc   : > { %v499_v52 = vpack.c.bf16 %v497_v49, %v496_v48 }
 0x1cd   : > { %v498_v53 = vpack.c.bf16 %v495_v51, %v494_v50 }
 0x1cf   : > { %783 = vmatprep.mubr.bf16.mxu0 %v498_v53 }
 0x1d0   : > { %784 = vmatmul.mubr.bf16.vlgmr.msra.gmra.mrb[4].mxu0 %v499_v52 }
 0x2a3   : > { %v785_v55 = vpop.f32.mrb[4].mxu0 }
 0x2a4   : > { %v605_v56 = vpop.f32.mrb[5].mxu0  ;;  %v614_v61 = vadd.f32 %v785_v55, %v704_v54 }
 0x2a5   : > { %v606_v57 = vadd.f32 %v704_v54, %v605_v56  ;;  %v786_v58 = vpop.f32.mrb[6].mxu0 }
 0x2a6   : > { %v608_v59 = vpop.f32.mrb[7].mxu0  ;;  %v617_v62 = vadd.f32 %v786_v58, %v704_v54  ;;  %623 = vst.msk [vmem:[%s280_s11 + $0x10] sm:$0xff] %vm620_vm1, %v614_v61 }
 0x2a7   : > { %621 = vst.msk [vmem:[%s280_s11] sm:$0xff] %vm620_vm1, %v606_v57  ;;  %v609_v60 = vadd.f32 %v704_v54, %v608_v59 }
 0x2a8   : > { %624 = vst.msk [vmem:[%s280_s11 + $0x18] sm:$0xff] %vm620_vm1, %v617_v62 }
 0x2a9   : > { %622 = vst.msk [vmem:[%s280_s11 + $0x8] sm:$0xff] %vm620_vm1, %v609_v60 }
 0x2aa PF: > { %s17_s24 = sadd.s32 1, %s819_s24  }
 0x2ab   : > { %p14_p4 = scmp.ge.s32.totalorder %s17_s24, 4  }
 0x2ad   :  { %16 = sbr.rel (!%p14_p4) target bundleno = 1 (0x1), region = 78 }

</bundles_post_ra>
